<compile_context>
chip_gen: v5e
topology: v5e:2x2
jax: 0.10.0
libtpu: 0.0.40
codegen_flags: <defaults>
</compile_context>

<pallas_src>
import jax
import jax.numpy as jnp
from jax.experimental import pallas as pl
from jax.experimental.pallas import tpu as pltpu


LN_EPS = 1e-5


def _round_up(a, m):
    return (a + m - 1) // m * m


def _layernorm_fast(x, g, b, eps=LN_EPS):
    """Two independent lane reductions (XLUs can run them concurrently)."""
    inv_d = 1.0 / x.shape[-1]
    mu = jnp.sum(x, axis=-1, keepdims=True) * inv_d
    ms = jnp.sum(x * x, axis=-1, keepdims=True) * inv_d
    var = ms - mu * mu
    return (x - mu) * jax.lax.rsqrt(var + eps) * g + b


def transformer_kernel(x_ref, wbig_ref, w2_ref, vecs_ref, wout_ref, out_ref):
    """Whole encoder stack + (lane-padded) output head for one batch tile.

    Weight refs use constant index_maps, so they are fetched once and stay
    VMEM-resident across grid steps; the layer loop is statically unrolled.
    """
    x = x_ref[...]                               # (BM, D) f32 activations
    num_layers, D, _ = wbig_ref.shape
    FF = w2_ref.shape[1]

    for l in range(num_layers):                  # static unroll (L small & static)
        vecs = vecs_ref[l]                       # (8, W) packed per-layer vectors, f32
        b_attn = vecs[0:1, :D]
        g1, be1 = vecs[1:2, :D], vecs[2:3, :D]
        b2 = vecs[3:4, :D]
        g2, be2 = vecs[4:5, :D], vecs[5:6, :D]
        b1 = vecs[6:7, :FF]

        # Self-attention (seq_len == 1): softmax over one key == 1, so
        # attn == out_proj(V) == x @ (Wv @ Wo) + (bv @ Wo + bo), pre-fused.
        attn = jnp.dot(x.astype(jnp.bfloat16), wbig_ref[l, :, :D],
                       preferred_element_type=jnp.float32) + b_attn
        h = _layernorm_fast(x + attn, g1, be1)

        # Feed-forward: linear -> relu -> linear (dropout omitted, eval mode).
        ff = jnp.maximum(
            jnp.dot(h.astype(jnp.bfloat16), wbig_ref[l, :, D:],
                    preferred_element_type=jnp.float32) + b1,
            0.0)
        ff = jnp.dot(ff.astype(jnp.bfloat16), w2_ref[l],
                     preferred_element_type=jnp.float32) + b2
        x = _layernorm_fast(h + ff, g2, be2)

    # Output head, lane-padded to 128 columns -> full-width unmasked store.
    # (bout is added in the wrapper after slicing the real columns.)
    out_ref[...] = jnp.dot(x.astype(jnp.bfloat16), wout_ref[...],
                           preferred_element_type=jnp.float32)


def prepare_params(p):
    """One-time wrapper-side prep: fuse attention, pack slabs, cast to bf16."""
    L, D, _ = p["wv"].shape
    FF = p["w1"].shape[-1]
    OUT = p["wout"].shape[-1]
    W = max(D, FF)
    OUT_PAD = max(128, _round_up(OUT, 128))

    # Fuse the two attention projections in f32 (exact up to rounding).
    w_attn = jnp.einsum("lij,ljk->lik", p["wv"], p["wo"])            # (L, D, D)
    b_attn = jnp.einsum("lij,ljk->lik", p["bv"], p["wo"]) + p["bo"]  # (L, 1, D)

    def pad_w(v):
        return jnp.pad(v, ((0, 0), (0, 0), (0, W - v.shape[-1])))

    # Pack every per-layer bias / LN vector into one (L, 8, W) f32 slab:
    # rows = [b_attn, g1, be1, b2, g2, be2, b1, pad].
    vecs = jnp.concatenate(
        [pad_w(b_attn), pad_w(p["g1"]), pad_w(p["be1"]), pad_w(p["b2"]),
         pad_w(p["g2"]), pad_w(p["be2"]), pad_w(p["b1"]),
         jnp.zeros((L, 1, W), jnp.float32)], axis=1)

    # One big bf16 weight slab per layer: [W_attn | W1] along the lane dim.
    w_big = jnp.concatenate([w_attn, p["w1"]], axis=-1).astype(jnp.bfloat16)

    # Output head padded to a full 128-lane tile (zeros beyond real columns).
    wout_pad = jnp.zeros((D, OUT_PAD), jnp.float32)
    wout_pad = wout_pad.at[:, :OUT].set(p["wout"]).astype(jnp.bfloat16)

    return dict(
        w_big=w_big,                              # (L, D, D+FF) bf16
        w2=p["w2"].astype(jnp.bfloat16),          # (L, FF, D)   bf16
        vecs=vecs,                                # (L, 8, W)    f32
        wout=wout_pad,                            # (D, OUT_PAD) bf16
        bout=p["bout"],                           # (1, OUT)     f32 (added in wrapper)
    )


@jax.jit
def transformer_forward(x, prepped):
    B = x.shape[0]
    L, D, DFF = prepped["w_big"].shape
    FF = DFF - D
    OUT = prepped["bout"].shape[-1]
    OUT_PAD = prepped["wout"].shape[-1]

    x2 = x.reshape(B, -1).astype(jnp.float32)     # x.view(B, 1, -1), seq squeezed
    # seq_len==1 fusion is only valid if the flattened features == d_model.
    assert x2.shape[1] == D, "seq_len==1 fusion requires features == d_model"

    # Batch tiling: 256-aligned tiles at large B (v6e/v7x MXU + v7x megacore +
    # bounded VMEM), 8-aligned at small B.  Zero-padded rows are discarded.
    BM = 256 if B >= 256 else _round_up(B, 8)
    B_pad = _round_up(B, BM)
    if B_pad != B:
        x2 = jnp.pad(x2, ((0, B_pad - B), (0, 0)))

    flops = 2 * B_pad * (L * (D * D + 2 * D * FF) + D * OUT_PAD)
    bytes_accessed = (x2.size * 4 + prepped["w_big"].size * 2
                      + prepped["w2"].size * 2 + prepped["vecs"].size * 4
                      + prepped["wout"].size * 2 + B_pad * OUT_PAD * 4)

    out = pl.pallas_call(
        transformer_kernel,
        out_shape=jax.ShapeDtypeStruct((B_pad, OUT_PAD), jnp.float32),
        grid_spec=pltpu.PrefetchScalarGridSpec(
            num_scalar_prefetch=0,
            grid=(B_pad // BM,),
            in_specs=[
                pl.BlockSpec((BM, D), lambda i: (i, 0)),
                pl.BlockSpec((L, D, DFF), lambda i: (0, 0, 0)),   # resident
                pl.BlockSpec((L, FF, D), lambda i: (0, 0, 0)),    # resident
                pl.BlockSpec(prepped["vecs"].shape, lambda i: (0, 0, 0)),
                pl.BlockSpec((D, OUT_PAD), lambda i: (0, 0)),
            ],
            out_specs=pl.BlockSpec((BM, OUT_PAD), lambda i: (i, 0)),
        ),
        compiler_params=pltpu.CompilerParams(
            dimension_semantics=("parallel",)),
        cost_estimate=pl.CostEstimate(flops=flops, transcendentals=0,
                                      bytes_accessed=bytes_accessed),
    )(x2, prepped["w_big"], prepped["w2"], prepped["vecs"], prepped["wout"])

    # Slice real rows / columns, add the output bias here (keeps a tiny (1,1)
    # array out of the kernel's DMA list).
    out = out[:B, :OUT] + prepped["bout"]
    return out.reshape(B, 1, OUT)                 # (batch, seq_len=1, output_dim)


def _layernorm_ref(x, g, b, eps=LN_EPS):
    """Classic two-pass LN for the f32 reference (validates the fast form)."""
    mu = jnp.mean(x, axis=-1, keepdims=True)
    xc = x - mu
    var = jnp.mean(xc * xc, axis=-1, keepdims=True)
    return xc * jax.lax.rsqrt(var + eps) * g + b


def reference_forward(x, p):
    """Pure-JAX f32 reference, same math as the PyTorch eval-mode forward."""
    B = x.shape[0]
    h = x.reshape(B, -1)
    L = p["wv"].shape[0]
    for l in range(L):
        v = h @ p["wv"][l] + p["bv"][l]
        attn = v @ p["wo"][l] + p["bo"][l]
        h = _layernorm_ref(h + attn, p["g1"][l], p["be1"][l])
        ff = jnp.maximum(h @ p["w1"][l] + p["b1"][l], 0.0) @ p["w2"][l] + p["b2"][l]
        h = _layernorm_ref(h + ff, p["g2"][l], p["be2"][l])
    out = h @ p["wout"] + p["bout"]
    return out.reshape(B, 1, -1)


def init_params(key, L, D, FF, OUT, scale=0.02):
    """Raw (PyTorch-equivalent) parameters, stored (in, out) so x @ W + b."""
    def rnd(i, shape):
        return scale * jax.random.normal(jax.random.fold_in(key, i), shape,
                                         jnp.float32)
    return dict(
        wv=rnd(0, (L, D, D)),   bv=rnd(1, (L, 1, D)),
        wo=rnd(2, (L, D, D)),   bo=rnd(3, (L, 1, D)),
        g1=jnp.ones((L, 1, D), jnp.float32),
        be1=jnp.zeros((L, 1, D), jnp.float32),
        w1=rnd(4, (L, D, FF)),  b1=rnd(5, (L, 1, FF)),
        w2=rnd(6, (L, FF, D)),  b2=rnd(7, (L, 1, D)),
        g2=jnp.ones((L, 1, D), jnp.float32),
        be2=jnp.zeros((L, 1, D), jnp.float32),
        wout=rnd(8, (D, OUT)),  bout=rnd(9, (1, OUT)),
    )


if __name__ == "__main__":
    # Small shapes consistent with the module: input_dim=128, num_heads=4
    # (head count is a no-op at seq_len=1), num_layers=2, dim_feedforward=256,
    # output_dim=1, batch=8.
    B, D, FF, L, OUT = 8, 128, 256, 2, 1
    key = jax.random.PRNGKey(0)
    x = jax.random.normal(jax.random.fold_in(key, 100), (B, D), jnp.float32)

    params = init_params(key, L, D, FF, OUT)
    prepped = prepare_params(params)

    out = transformer_forward(x, prepped)
    out = jax.block_until_ready(out)

    ref = reference_forward(x, params)
    assert out.shape == (B, 1, OUT), out.shape
    err = jnp.max(jnp.abs(out - ref))
    # bf16 weights/activation-casts vs f32 reference -> loose-but-meaningful tol.
    assert jnp.allclose(out, ref, atol=1e-2, rtol=1e-2), f"max err {err}"
    print("KERNEL_OK")
</pallas_src>

<mosaic_0001>
module attributes {stable_mosaic.version = 11 : i64} {
  func.func @transformer_kernel(%arg0: i32, %arg1: memref<8x128xf32, #tpu.memory_space<vmem>>, %arg2: memref<2x128x384xbf16, #tpu.memory_space<vmem>>, %arg3: memref<2x256x128xbf16, #tpu.memory_space<vmem>>, %arg4: memref<2x8x256xf32, #tpu.memory_space<vmem>>, %arg5: memref<128x128xbf16, #tpu.memory_space<vmem>>, %arg6: memref<8x128xf32, #tpu.memory_space<vmem>>) attributes {dimension_semantics = [#tpu.dimension_semantics<parallel>], iteration_bounds = array<i64: 1>, scalar_prefetch = 0 : i64, scratch_operands = 0 : i64, tpu.core_type = #tpu.core_type<tc>, window_params = [{transform_indices = @transform_0, window_bounds = array<i64: 8, 128>}, {pipeline_mode = #tpu.pipeline_mode<synchronous>, transform_indices = @transform_1, window_bounds = array<i64: 2, 128, 384>}, {pipeline_mode = #tpu.pipeline_mode<synchronous>, transform_indices = @transform_2, window_bounds = array<i64: 2, 256, 128>}, {pipeline_mode = #tpu.pipeline_mode<synchronous>, transform_indices = @transform_3, window_bounds = array<i64: 2, 8, 256>}, {pipeline_mode = #tpu.pipeline_mode<synchronous>, transform_indices = @transform_4, window_bounds = array<i64: 128, 128>}, {transform_indices = @transform_5, window_bounds = array<i64: 8, 128>}]} {
    %c0 = arith.constant 0 : index
    %c0_0 = arith.constant 0 : index
    %0 = vector.load %arg1[%c0, %c0_0] : memref<8x128xf32, #tpu.memory_space<vmem>>, vector<8x128xf32>
    %c0_1 = arith.constant 0 : index
    %c0_2 = arith.constant 0 : index
    %c0_3 = arith.constant 0 : index
    %1 = vector.load %arg4[%c0_1, %c0_2, %c0_3] : memref<2x8x256xf32, #tpu.memory_space<vmem>>, vector<1x8x256xf32>
    %2 = vector.shape_cast %1 : vector<1x8x256xf32> to vector<8x256xf32>
    %3 = vector.extract_strided_slice %2 {offsets = [0, 0], sizes = [1, 128], strides = [1, 1]} : vector<8x256xf32> to vector<1x128xf32>
    %4 = vector.extract_strided_slice %2 {offsets = [1, 0], sizes = [1, 128], strides = [1, 1]} : vector<8x256xf32> to vector<1x128xf32>
    %5 = vector.extract_strided_slice %2 {offsets = [2, 0], sizes = [1, 128], strides = [1, 1]} : vector<8x256xf32> to vector<1x128xf32>
    %6 = vector.extract_strided_slice %2 {offsets = [3, 0], sizes = [1, 128], strides = [1, 1]} : vector<8x256xf32> to vector<1x128xf32>
    %7 = vector.extract_strided_slice %2 {offsets = [4, 0], sizes = [1, 128], strides = [1, 1]} : vector<8x256xf32> to vector<1x128xf32>
    %8 = vector.extract_strided_slice %2 {offsets = [5, 0], sizes = [1, 128], strides = [1, 1]} : vector<8x256xf32> to vector<1x128xf32>
    %9 = vector.extract_strided_slice %2 {offsets = [6, 0], sizes = [1, 256], strides = [1, 1]} : vector<8x256xf32> to vector<1x256xf32>
    %10 = arith.truncf %0 : vector<8x128xf32> to vector<8x128xbf16>
    %c0_4 = arith.constant 0 : index
    %c0_5 = arith.constant 0 : index
    %c0_6 = arith.constant 0 : index
    %11 = vector.load %arg2[%c0_4, %c0_5, %c0_6] : memref<2x128x384xbf16, #tpu.memory_space<vmem>>, vector<1x128x128xbf16>
    %12 = vector.shape_cast %11 : vector<1x128x128xbf16> to vector<128x128xbf16>
    %cst = arith.constant dense<0.000000e+00> : vector<8x128xf32>
    %13 = tpu.matmul %10, %12, %cst {dimension_numbers = #tpu.dot_dimension_numbers<[1], [0], [0], [1], [0, 0, 1, 1], [], []>} : vector<8x128xbf16>, vector<128x128xbf16>, vector<8x128xf32> -> vector<8x128xf32>
    %14 = vector.broadcast %3 : vector<1x128xf32> to vector<8x128xf32>
    %15 = arith.addf %13, %14 : vector<8x128xf32>
    %16 = arith.addf %0, %15 : vector<8x128xf32>
    %cst_7 = arith.constant dense<0.000000e+00> : vector<8xf32>
    %17 = vector.multi_reduction <add>, %16, %cst_7 [1] : vector<8x128xf32> to vector<8xf32>
    %18 = vector.shape_cast %17 : vector<8xf32> to vector<8x1xf32>
    %cst_8 = arith.constant 7.812500e-03 : f32
    %19 = vector.broadcast %cst_8 : f32 to vector<8x1xf32>
    %20 = arith.mulf %18, %19 : vector<8x1xf32>
    %21 = arith.mulf %16, %16 : vector<8x128xf32>
    %cst_9 = arith.constant dense<0.000000e+00> : vector<8xf32>
    %22 = vector.multi_reduction <add>, %21, %cst_9 [1] : vector<8x128xf32> to vector<8xf32>
    %23 = vector.shape_cast %22 : vector<8xf32> to vector<8x1xf32>
    %cst_10 = arith.constant 7.812500e-03 : f32
    %24 = vector.broadcast %cst_10 : f32 to vector<8x1xf32>
    %25 = arith.mulf %23, %24 : vector<8x1xf32>
    %26 = arith.mulf %20, %20 : vector<8x1xf32>
    %27 = arith.subf %25, %26 : vector<8x1xf32>
    %28 = vector.broadcast %20 : vector<8x1xf32> to vector<8x128xf32>
    %29 = arith.subf %16, %28 : vector<8x128xf32>
    %cst_11 = arith.constant 9.99999974E-6 : f32
    %30 = vector.broadcast %cst_11 : f32 to vector<8x1xf32>
    %31 = arith.addf %27, %30 : vector<8x1xf32>
    %32 = math.rsqrt %31 : vector<8x1xf32>
    %33 = vector.broadcast %32 : vector<8x1xf32> to vector<8x128xf32>
    %34 = arith.mulf %29, %33 : vector<8x128xf32>
    %35 = vector.broadcast %4 : vector<1x128xf32> to vector<8x128xf32>
    %36 = arith.mulf %34, %35 : vector<8x128xf32>
    %37 = vector.broadcast %5 : vector<1x128xf32> to vector<8x128xf32>
    %38 = arith.addf %36, %37 : vector<8x128xf32>
    %39 = arith.truncf %38 : vector<8x128xf32> to vector<8x128xbf16>
    %c0_12 = arith.constant 0 : index
    %c0_13 = arith.constant 0 : index
    %c128 = arith.constant 128 : index
    %40 = vector.load %arg2[%c0_12, %c0_13, %c128] : memref<2x128x384xbf16, #tpu.memory_space<vmem>>, vector<1x128x256xbf16>
    %41 = vector.shape_cast %40 : vector<1x128x256xbf16> to vector<128x256xbf16>
    %cst_14 = arith.constant dense<0.000000e+00> : vector<8x256xf32>
    %42 = tpu.matmul %39, %41, %cst_14 {dimension_numbers = #tpu.dot_dimension_numbers<[1], [0], [0], [1], [0, 0, 1, 1], [], []>} : vector<8x128xbf16>, vector<128x256xbf16>, vector<8x256xf32> -> vector<8x256xf32>
    %43 = vector.broadcast %9 : vector<1x256xf32> to vector<8x256xf32>
    %44 = arith.addf %42, %43 : vector<8x256xf32>
    %cst_15 = arith.constant 0.000000e+00 : f32
    %45 = vector.broadcast %cst_15 : f32 to vector<8x256xf32>
    %46 = arith.maximumf %44, %45 : vector<8x256xf32>
    %47 = arith.truncf %46 : vector<8x256xf32> to vector<8x256xbf16>
    %c0_16 = arith.constant 0 : index
    %c0_17 = arith.constant 0 : index
    %c0_18 = arith.constant 0 : index
    %48 = vector.load %arg3[%c0_16, %c0_17, %c0_18] : memref<2x256x128xbf16, #tpu.memory_space<vmem>>, vector<1x256x128xbf16>
    %49 = vector.shape_cast %48 : vector<1x256x128xbf16> to vector<256x128xbf16>
    %cst_19 = arith.constant dense<0.000000e+00> : vector<8x128xf32>
    %50 = tpu.matmul %47, %49, %cst_19 {dimension_numbers = #tpu.dot_dimension_numbers<[1], [0], [0], [1], [0, 0, 1, 1], [], []>} : vector<8x256xbf16>, vector<256x128xbf16>, vector<8x128xf32> -> vector<8x128xf32>
    %51 = vector.broadcast %6 : vector<1x128xf32> to vector<8x128xf32>
    %52 = arith.addf %50, %51 : vector<8x128xf32>
    %53 = arith.addf %38, %52 : vector<8x128xf32>
    %cst_20 = arith.constant dense<0.000000e+00> : vector<8xf32>
    %54 = vector.multi_reduction <add>, %53, %cst_20 [1] : vector<8x128xf32> to vector<8xf32>
    %55 = vector.shape_cast %54 : vector<8xf32> to vector<8x1xf32>
    %cst_21 = arith.constant 7.812500e-03 : f32
    %56 = vector.broadcast %cst_21 : f32 to vector<8x1xf32>
    %57 = arith.mulf %55, %56 : vector<8x1xf32>
    %58 = arith.mulf %53, %53 : vector<8x128xf32>
    %cst_22 = arith.constant dense<0.000000e+00> : vector<8xf32>
    %59 = vector.multi_reduction <add>, %58, %cst_22 [1] : vector<8x128xf32> to vector<8xf32>
    %60 = vector.shape_cast %59 : vector<8xf32> to vector<8x1xf32>
    %cst_23 = arith.constant 7.812500e-03 : f32
    %61 = vector.broadcast %cst_23 : f32 to vector<8x1xf32>
    %62 = arith.mulf %60, %61 : vector<8x1xf32>
    %63 = arith.mulf %57, %57 : vector<8x1xf32>
    %64 = arith.subf %62, %63 : vector<8x1xf32>
    %65 = vector.broadcast %57 : vector<8x1xf32> to vector<8x128xf32>
    %66 = arith.subf %53, %65 : vector<8x128xf32>
    %cst_24 = arith.constant 9.99999974E-6 : f32
    %67 = vector.broadcast %cst_24 : f32 to vector<8x1xf32>
    %68 = arith.addf %64, %67 : vector<8x1xf32>
    %69 = math.rsqrt %68 : vector<8x1xf32>
    %70 = vector.broadcast %69 : vector<8x1xf32> to vector<8x128xf32>
    %71 = arith.mulf %66, %70 : vector<8x128xf32>
    %72 = vector.broadcast %7 : vector<1x128xf32> to vector<8x128xf32>
    %73 = arith.mulf %71, %72 : vector<8x128xf32>
    %74 = vector.broadcast %8 : vector<1x128xf32> to vector<8x128xf32>
    %75 = arith.addf %73, %74 : vector<8x128xf32>
    %c1 = arith.constant 1 : index
    %c0_25 = arith.constant 0 : index
    %c0_26 = arith.constant 0 : index
    %76 = vector.load %arg4[%c1, %c0_25, %c0_26] : memref<2x8x256xf32, #tpu.memory_space<vmem>>, vector<1x8x256xf32>
    %77 = vector.shape_cast %76 : vector<1x8x256xf32> to vector<8x256xf32>
    %78 = vector.extract_strided_slice %77 {offsets = [0, 0], sizes = [1, 128], strides = [1, 1]} : vector<8x256xf32> to vector<1x128xf32>
    %79 = vector.extract_strided_slice %77 {offsets = [1, 0], sizes = [1, 128], strides = [1, 1]} : vector<8x256xf32> to vector<1x128xf32>
    %80 = vector.extract_strided_slice %77 {offsets = [2, 0], sizes = [1, 128], strides = [1, 1]} : vector<8x256xf32> to vector<1x128xf32>
    %81 = vector.extract_strided_slice %77 {offsets = [3, 0], sizes = [1, 128], strides = [1, 1]} : vector<8x256xf32> to vector<1x128xf32>
    %82 = vector.extract_strided_slice %77 {offsets = [4, 0], sizes = [1, 128], strides = [1, 1]} : vector<8x256xf32> to vector<1x128xf32>
    %83 = vector.extract_strided_slice %77 {offsets = [5, 0], sizes = [1, 128], strides = [1, 1]} : vector<8x256xf32> to vector<1x128xf32>
    %84 = vector.extract_strided_slice %77 {offsets = [6, 0], sizes = [1, 256], strides = [1, 1]} : vector<8x256xf32> to vector<1x256xf32>
    %85 = arith.truncf %75 : vector<8x128xf32> to vector<8x128xbf16>
    %c1_27 = arith.constant 1 : index
    %c0_28 = arith.constant 0 : index
    %c0_29 = arith.constant 0 : index
    %86 = vector.load %arg2[%c1_27, %c0_28, %c0_29] : memref<2x128x384xbf16, #tpu.memory_space<vmem>>, vector<1x128x128xbf16>
    %87 = vector.shape_cast %86 : vector<1x128x128xbf16> to vector<128x128xbf16>
    %cst_30 = arith.constant dense<0.000000e+00> : vector<8x128xf32>
    %88 = tpu.matmul %85, %87, %cst_30 {dimension_numbers = #tpu.dot_dimension_numbers<[1], [0], [0], [1], [0, 0, 1, 1], [], []>} : vector<8x128xbf16>, vector<128x128xbf16>, vector<8x128xf32> -> vector<8x128xf32>
    %89 = vector.broadcast %78 : vector<1x128xf32> to vector<8x128xf32>
    %90 = arith.addf %88, %89 : vector<8x128xf32>
    %91 = arith.addf %75, %90 : vector<8x128xf32>
    %cst_31 = arith.constant dense<0.000000e+00> : vector<8xf32>
    %92 = vector.multi_reduction <add>, %91, %cst_31 [1] : vector<8x128xf32> to vector<8xf32>
    %93 = vector.shape_cast %92 : vector<8xf32> to vector<8x1xf32>
    %cst_32 = arith.constant 7.812500e-03 : f32
    %94 = vector.broadcast %cst_32 : f32 to vector<8x1xf32>
    %95 = arith.mulf %93, %94 : vector<8x1xf32>
    %96 = arith.mulf %91, %91 : vector<8x128xf32>
    %cst_33 = arith.constant dense<0.000000e+00> : vector<8xf32>
    %97 = vector.multi_reduction <add>, %96, %cst_33 [1] : vector<8x128xf32> to vector<8xf32>
    %98 = vector.shape_cast %97 : vector<8xf32> to vector<8x1xf32>
    %cst_34 = arith.constant 7.812500e-03 : f32
    %99 = vector.broadcast %cst_34 : f32 to vector<8x1xf32>
    %100 = arith.mulf %98, %99 : vector<8x1xf32>
    %101 = arith.mulf %95, %95 : vector<8x1xf32>
    %102 = arith.subf %100, %101 : vector<8x1xf32>
    %103 = vector.broadcast %95 : vector<8x1xf32> to vector<8x128xf32>
    %104 = arith.subf %91, %103 : vector<8x128xf32>
    %cst_35 = arith.constant 9.99999974E-6 : f32
    %105 = vector.broadcast %cst_35 : f32 to vector<8x1xf32>
    %106 = arith.addf %102, %105 : vector<8x1xf32>
    %107 = math.rsqrt %106 : vector<8x1xf32>
    %108 = vector.broadcast %107 : vector<8x1xf32> to vector<8x128xf32>
    %109 = arith.mulf %104, %108 : vector<8x128xf32>
    %110 = vector.broadcast %79 : vector<1x128xf32> to vector<8x128xf32>
    %111 = arith.mulf %109, %110 : vector<8x128xf32>
    %112 = vector.broadcast %80 : vector<1x128xf32> to vector<8x128xf32>
    %113 = arith.addf %111, %112 : vector<8x128xf32>
    %114 = arith.truncf %113 : vector<8x128xf32> to vector<8x128xbf16>
    %c1_36 = arith.constant 1 : index
    %c0_37 = arith.constant 0 : index
    %c128_38 = arith.constant 128 : index
    %115 = vector.load %arg2[%c1_36, %c0_37, %c128_38] : memref<2x128x384xbf16, #tpu.memory_space<vmem>>, vector<1x128x256xbf16>
    %116 = vector.shape_cast %115 : vector<1x128x256xbf16> to vector<128x256xbf16>
    %cst_39 = arith.constant dense<0.000000e+00> : vector<8x256xf32>
    %117 = tpu.matmul %114, %116, %cst_39 {dimension_numbers = #tpu.dot_dimension_numbers<[1], [0], [0], [1], [0, 0, 1, 1], [], []>} : vector<8x128xbf16>, vector<128x256xbf16>, vector<8x256xf32> -> vector<8x256xf32>
    %118 = vector.broadcast %84 : vector<1x256xf32> to vector<8x256xf32>
    %119 = arith.addf %117, %118 : vector<8x256xf32>
    %cst_40 = arith.constant 0.000000e+00 : f32
    %120 = vector.broadcast %cst_40 : f32 to vector<8x256xf32>
    %121 = arith.maximumf %119, %120 : vector<8x256xf32>
    %122 = arith.truncf %121 : vector<8x256xf32> to vector<8x256xbf16>
    %c1_41 = arith.constant 1 : index
    %c0_42 = arith.constant 0 : index
    %c0_43 = arith.constant 0 : index
    %123 = vector.load %arg3[%c1_41, %c0_42, %c0_43] : memref<2x256x128xbf16, #tpu.memory_space<vmem>>, vector<1x256x128xbf16>
    %124 = vector.shape_cast %123 : vector<1x256x128xbf16> to vector<256x128xbf16>
    %cst_44 = arith.constant dense<0.000000e+00> : vector<8x128xf32>
    %125 = tpu.matmul %122, %124, %cst_44 {dimension_numbers = #tpu.dot_dimension_numbers<[1], [0], [0], [1], [0, 0, 1, 1], [], []>} : vector<8x256xbf16>, vector<256x128xbf16>, vector<8x128xf32> -> vector<8x128xf32>
    %126 = vector.broadcast %81 : vector<1x128xf32> to vector<8x128xf32>
    %127 = arith.addf %125, %126 : vector<8x128xf32>
    %128 = arith.addf %113, %127 : vector<8x128xf32>
    %cst_45 = arith.constant dense<0.000000e+00> : vector<8xf32>
    %129 = vector.multi_reduction <add>, %128, %cst_45 [1] : vector<8x128xf32> to vector<8xf32>
    %130 = vector.shape_cast %129 : vector<8xf32> to vector<8x1xf32>
    %cst_46 = arith.constant 7.812500e-03 : f32
    %131 = vector.broadcast %cst_46 : f32 to vector<8x1xf32>
    %132 = arith.mulf %130, %131 : vector<8x1xf32>
    %133 = arith.mulf %128, %128 : vector<8x128xf32>
    %cst_47 = arith.constant dense<0.000000e+00> : vector<8xf32>
    %134 = vector.multi_reduction <add>, %133, %cst_47 [1] : vector<8x128xf32> to vector<8xf32>
    %135 = vector.shape_cast %134 : vector<8xf32> to vector<8x1xf32>
    %cst_48 = arith.constant 7.812500e-03 : f32
    %136 = vector.broadcast %cst_48 : f32 to vector<8x1xf32>
    %137 = arith.mulf %135, %136 : vector<8x1xf32>
    %138 = arith.mulf %132, %132 : vector<8x1xf32>
    %139 = arith.subf %137, %138 : vector<8x1xf32>
    %140 = vector.broadcast %132 : vector<8x1xf32> to vector<8x128xf32>
    %141 = arith.subf %128, %140 : vector<8x128xf32>
    %cst_49 = arith.constant 9.99999974E-6 : f32
    %142 = vector.broadcast %cst_49 : f32 to vector<8x1xf32>
    %143 = arith.addf %139, %142 : vector<8x1xf32>
    %144 = math.rsqrt %143 : vector<8x1xf32>
    %145 = vector.broadcast %144 : vector<8x1xf32> to vector<8x128xf32>
    %146 = arith.mulf %141, %145 : vector<8x128xf32>
    %147 = vector.broadcast %82 : vector<1x128xf32> to vector<8x128xf32>
    %148 = arith.mulf %146, %147 : vector<8x128xf32>
    %149 = vector.broadcast %83 : vector<1x128xf32> to vector<8x128xf32>
    %150 = arith.addf %148, %149 : vector<8x128xf32>
    %151 = arith.truncf %150 : vector<8x128xf32> to vector<8x128xbf16>
    %c0_50 = arith.constant 0 : index
    %c0_51 = arith.constant 0 : index
    %152 = vector.load %arg5[%c0_50, %c0_51] : memref<128x128xbf16, #tpu.memory_space<vmem>>, vector<128x128xbf16>
    %cst_52 = arith.constant dense<0.000000e+00> : vector<8x128xf32>
    %153 = tpu.matmul %151, %152, %cst_52 {dimension_numbers = #tpu.dot_dimension_numbers<[1], [0], [0], [1], [0, 0, 1, 1], [], []>} : vector<8x128xbf16>, vector<128x128xbf16>, vector<8x128xf32> -> vector<8x128xf32>
    %c0_53 = arith.constant 0 : index
    %c0_54 = arith.constant 0 : index
    %154 = vector.load %arg6[%c0_53, %c0_54] : memref<8x128xf32, #tpu.memory_space<vmem>>, vector<8x128xf32>
    tpu.vector_store %arg6[%c0_53, %c0_54], %153 {strides = array<i32>} : memref<8x128xf32, #tpu.memory_space<vmem>>, vector<8x128xf32>,
    return
  }
  func.func @transform_0(%arg0: i32) -> (i32, i32) {
    %c0_i32 = arith.constant 0 : i32
    %c0_i32_0 = arith.constant 0 : i32
    return %arg0, %c0_i32 : i32, i32
  }
  func.func @transform_1(%arg0: i32) -> (i32, i32, i32) {
    %c0_i32 = arith.constant 0 : i32
    %c0_i32_0 = arith.constant 0 : i32
    %c0_i32_1 = arith.constant 0 : i32
    %c0_i32_2 = arith.constant 0 : i32
    return %c0_i32, %c0_i32_0, %c0_i32_1 : i32, i32, i32
  }
  func.func @transform_2(%arg0: i32) -> (i32, i32, i32) {
    %c0_i32 = arith.constant 0 : i32
    %c0_i32_0 = arith.constant 0 : i32
    %c0_i32_1 = arith.constant 0 : i32
    %c0_i32_2 = arith.constant 0 : i32
    return %c0_i32, %c0_i32_0, %c0_i32_1 : i32, i32, i32
  }
  func.func @transform_3(%arg0: i32) -> (i32, i32, i32) {
    %c0_i32 = arith.constant 0 : i32
    %c0_i32_0 = arith.constant 0 : i32
    %c0_i32_1 = arith.constant 0 : i32
    %c0_i32_2 = arith.constant 0 : i32
    return %c0_i32, %c0_i32_0, %c0_i32_1 : i32, i32, i32
  }
  func.func @transform_4(%arg0: i32) -> (i32, i32) {
    %c0_i32 = arith.constant 0 : i32
    %c0_i32_0 = arith.constant 0 : i32
    %c0_i32_1 = arith.constant 0 : i32
    return %c0_i32, %c0_i32_0 : i32, i32
  }
  func.func @transform_5(%arg0: i32) -> (i32, i32) {
    %c0_i32 = arith.constant 0 : i32
    %c0_i32_0 = arith.constant 0 : i32
    return %arg0, %c0_i32 : i32, i32
  }
}

</mosaic_0001>

<bundles_post_ra>
// kernel: transformer_forward.1
= control target key start
LH: loop header
LB: loop body
LE: loop exit
PB: predicated region body
PF: predicated region fallthrough
CT: control target
= control target key end

     0   :  { %10 = vsyncpa [#allocation3], 0  ;;  %s1698_s0 = inlined_call_operand.hbm [shape: f32[8,128], index: 0, kind: input, shape index: {}]   ;;  %s1699_s1 = inlined_call_operand.hbm [shape: bf16[2,128,384], index: 1, kind: input, shape index: {}]   ;;  %s1700_s2 = inlined_call_operand.hbm [shape: bf16[2,256,128], index: 2, kind: input, shape index: {}]   ;;  %s1701_s3 = inlined_call_operand.hbm [shape: f32[2,8,256], index: 3, kind: input, shape index: {}]   ;;  %s1702_s4 = inlined_call_operand.hbm [shape: bf16[128,128], index: 4, kind: input, shape index: {}]   ;;  %s1703_s5 = inlined_call_operand.vmem [shape: f32[8,128], index: 5, kind: output, shape index: {}]  }
   0x1   :  { %11 = vsyncpa [#allocation5], 0  ;;  %s28_s20 = sshll.u32 %s1699_s1, 4  ;;  %s29_s20 = int_to_ptr.hbm [resolvable:$true] %s28_s20 }
   0x2   :  { %12 = vsyncpa [#allocation8], 0  ;;  %s1609_s21 = smov [#allocation4]   ;;  %s54_s25 = sshll.u32 %s1701_s3, 4  ;;  %s55_s25 = int_to_ptr.hbm [resolvable:$true] %s54_s25 }
   0x3   :  { %s30_s22 = sshll.u32 %s1609_s21, 4  ;;  %s1610_s26 = smov 192   ;;  %s31_s22 = int_to_ptr.vmem [resolvable:$true] %s30_s22 }
   0x4   :  { %s1611_s27 = smov 12   ;;  %s1612_s28 = smov [#allocation7]  }
   0x5   :  { %36 = dma.hbm_to_vmem [thread:$0]  %s29_s20, 6144, %s31_s22, [#allocation5], %s1610_s26, %s1610_s26, %s1611_s27  }
   0x6   :  { %s56_s29 = sshll.u32 %s1612_s28, 4  ;;  %s1613_s30 = smov 256   ;;  %s57_s29 = int_to_ptr.vmem [resolvable:$true] %s56_s29 }
   0x7   :  { %s1614_s6 = smov 16   ;;  %s18_s8 = sshll.u32 %s1698_s0, 4  ;;  %s19_s8 = int_to_ptr.hbm [resolvable:$true] %s18_s8 }
   0x8   :  { %62 = dma.hbm_to_vmem [thread:$0]  %s55_s25, 512, %s57_s29, [#allocation8], %s1613_s30, %s1613_s30, %s1614_s6  }
   0x9   :  { %s1615_s9 = smov [#allocation2]   ;;  %s41_s12 = sshll.u32 %s1700_s2, 4  ;;  %s42_s12 = int_to_ptr.hbm [resolvable:$true] %s41_s12 }
   0xa   :  { %s20_s10 = sshll.u32 %s1615_s9, 4  ;;  %s1616_s13 = smov [#allocation6]   ;;  %s21_s10 = int_to_ptr.vmem [resolvable:$true] %s20_s10 }
   0xb   :  { %23 = dma.hbm_to_vmem [thread:$0]  %s19_s8, 128, %s21_s10, [#allocation3]  }
   0xc   :  { %s43_s14 = sshll.u32 %s1616_s13, 4  ;;  %s1617_s15 = smov 64   ;;  %s44_s14 = int_to_ptr.vmem [resolvable:$true] %s43_s14 }
   0xd   :  { %s1618_s16 = smov 4   ;;  %s67_s0 = sshll.u32 %s1702_s4, 4  ;;  %s68_s0 = int_to_ptr.hbm [resolvable:$true] %s67_s0 }
   0xe   :  { %49 = dma.hbm_to_vmem [thread:$0]  %s42_s12, 4096, %s44_s14, [#allocation5], %s1617_s15, %s1617_s15, %s1618_s16  }
   0xf   :  { %s1619_s19 = smov [#allocation9]  }
  0x10   :  { %s69_s20 = sshll.u32 %s1619_s19, 4  ;;  %s70_s20 = int_to_ptr.vmem [resolvable:$true] %s69_s20 }
  0x11   :  { %75 = dma.hbm_to_vmem [thread:$0]  %s68_s0, 1024, %s70_s20, [#allocation8], %s1617_s15, %s1617_s15, %s1618_s16  }
  0x12   :  { %1603 = dma.done.wait [#allocation3], 128  }
  0x13   :  { %1604 = vsyncadd [#allocation3], 4294967168 }
  0x14   :  { %1605 = dma.done.wait [#allocation5], 10240  }
  0x15   :  { %1606 = vsyncadd [#allocation5], 4294957056 }
  0x16   :  { %1607 = dma.done.wait [#allocation8], 1536  }
  0x17   :  { %1608 = vsyncadd [#allocation8], 4294965760  ;;  %v1054_v0 = vld [vmem:[#allocation4 + $0xa8] sm:$0xf]  ;;  %v1383_v1 = vld [vmem:[#allocation4 + $0xb0] sm:$0xf0] }
  0x18   :  { %v1050_v2 = vld [vmem:[#allocation4 + $0x90] sm:$0xf]  ;;  %v1055_v3 = vor.u32 %v1383_v1, %v1054_v0  ;;  %v1382_v4 = vld [vmem:[#allocation4 + $0x98] sm:$0xf0]  ;;  %v1046_v6 = vld [vmem:[#allocation4 + $0x78] sm:$0xf] }
  0x19   :  { %v1051_v5 = vor.u32 %v1382_v4, %v1050_v2  ;;  %v1381_v7 = vld [vmem:[#allocation4 + $0x80] sm:$0xf0]  ;;  %v1042_v9 = vld [vmem:[#allocation4 + $0x60] sm:$0xf]  ;;  %v1380_v10 = vld [vmem:[#allocation4 + $0x68] sm:$0xf0] }
  0x1a   :  { %165 = vmatpush.bf16.msra.mxu0 %v1055_v3  ;;  %v1047_v8 = vor.u32 %v1381_v7, %v1046_v6  ;;  %v1043_v11 = vor.u32 %v1380_v10, %v1042_v9  ;;  %v1038_v12 = vld [vmem:[#allocation4 + $0x48] sm:$0xf]  ;;  %v1379_v13 = vld [vmem:[#allocation4 + $0x50] sm:$0xf0]  ;;  %v1034_v15 = vld [vmem:[#allocation4 + $0x30] sm:$0xf] }
  0x1b   :  { %v1039_v14 = vor.u32 %v1379_v13, %v1038_v12  ;;  %v1378_v16 = vld [vmem:[#allocation4 + $0x38] sm:$0xf0]  ;;  %v1030_v18 = vld [vmem:[#allocation4 + $0x18] sm:$0xf]  ;;  %v1377_v19 = vld [vmem:[#allocation4 + $0x20] sm:$0xf0] }
  0x1c   :  { %v1035_v17 = vor.u32 %v1378_v16, %v1034_v15  ;;  %v1031_v20 = vor.u32 %v1377_v19, %v1030_v18  ;;  %v1026_v21 = vld [vmem:[#allocation4] sm:$0xf]  ;;  %v1376_v22 = vld [vmem:[#allocation4 + $0x8] sm:$0xf0]  ;;  %v96_v24 = vld [vmem:[#allocation2] sm:$0xff] }
  0x1d   :  { %v1027_v23 = vor.u32 %v1376_v22, %v1026_v21  ;;  %v99_v25 = vpack.c.bf16 %v96_v24, %v96_v24  ;;  %v1665_v26 = vld [vmem:[#allocation7] sm:$0xff]  ;;  %v1114_v33 = vld [vmem:[#allocation4 + $0xac] sm:$0xf]  ;;  %v1399_v34 = vld [vmem:[#allocation4 + $0xb4] sm:$0xf0] }
  0x1e   :  { %166 = vmatpush.bf16.msra.mxu0 %v1051_v5  ;;  %v116_v27 = vperm.slane %v1665_v26, 0  ;;  %v1398_v35 = vld [vmem:[#allocation4 + $0xb0] sm:$0xf]  ;;  %v1115_v36 = vor.u32 %v1399_v34, %v1114_v33  ;;  %v1116_v37 = vld [vmem:[#allocation4 + $0xb8] sm:$0xf0]  ;;  %v1412_v33 = vld [vmem:[#allocation6 + $0x60] sm:$0xff] }
  0x1f   :  { %v1119_v38 = vor.u32 %v1398_v35, %v1116_v37  ;;  %v1106_v39 = vld [vmem:[#allocation4 + $0x94] sm:$0xf]  ;;  %v1397_v40 = vld [vmem:[#allocation4 + $0x9c] sm:$0xf0]  ;;  %v1396_v41 = vld [vmem:[#allocation4 + $0x98] sm:$0xf] }
  0x20   :  { %304 = vmatpush.bf16.msra.mxu1 %v1115_v36  ;;  %v1107_v42 = vor.u32 %v1397_v40, %v1106_v39  ;;  %v1108_v43 = vld [vmem:[#allocation4 + $0xa0] sm:$0xf0]  ;;  %v1098_v45 = vld [vmem:[#allocation4 + $0x7c] sm:$0xf]  ;;  %v1395_v46 = vld [vmem:[#allocation4 + $0x84] sm:$0xf0] }
  0x21   :  { %317 = vmatpush.bf16.msra.mxu2 %v1119_v38  ;;  %v1111_v44 = vor.u32 %v1396_v41, %v1108_v43  ;;  %v1394_v47 = vld [vmem:[#allocation4 + $0x80] sm:$0xf]  ;;  %v1099_v48 = vor.u32 %v1395_v46, %v1098_v45  ;;  %v1100_v49 = vld [vmem:[#allocation4 + $0x88] sm:$0xf0]  ;;  %v1090_v51 = vld [vmem:[#allocation4 + $0x64] sm:$0xf] }
  0x22   :  { %167 = vmatpush.bf16.msra.mxu0 %v1047_v8  ;;  %v1103_v50 = vor.u32 %v1394_v47, %v1100_v49  ;;  %v1393_v52 = vld [vmem:[#allocation4 + $0x6c] sm:$0xf0]  ;;  %v1392_v53 = vld [vmem:[#allocation4 + $0x68] sm:$0xf]  ;;  %v1092_v55 = vld [vmem:[#allocation4 + $0x70] sm:$0xf0] }
  0x23   :  { %v1091_v54 = vor.u32 %v1393_v52, %v1090_v51  ;;  %v1095_v56 = vor.u32 %v1392_v53, %v1092_v55  ;;  %v1082_v57 = vld [vmem:[#allocation4 + $0x4c] sm:$0xf]  ;;  %v1391_v58 = vld [vmem:[#allocation4 + $0x54] sm:$0xf0]  ;;  %v1390_v59 = vld [vmem:[#allocation4 + $0x50] sm:$0xf] }
  0x24   :  { %305 = vmatpush.bf16.msra.mxu1 %v1107_v42  ;;  %v1083_v60 = vor.u32 %v1391_v58, %v1082_v57  ;;  %v1084_v61 = vld [vmem:[#allocation4 + $0x58] sm:$0xf0]  ;;  %v1074_v63 = vld [vmem:[#allocation4 + $0x34] sm:$0xf]  ;;  %v1389_v0 = vld [vmem:[#allocation4 + $0x3c] sm:$0xf0] }
  0x25   :  { %318 = vmatpush.bf16.msra.mxu2 %v1111_v44  ;;  %v1087_v62 = vor.u32 %v1390_v59, %v1084_v61  ;;  %v1388_v1 = vld [vmem:[#allocation4 + $0x38] sm:$0xf]  ;;  %v1075_v2 = vor.u32 %v1389_v0, %v1074_v63  ;;  %v1076_v3 = vld [vmem:[#allocation4 + $0x40] sm:$0xf0]  ;;  %v1066_v5 = vld [vmem:[#allocation4 + $0x1c] sm:$0xf] }
  0x26   :  { %168 = vmatpush.bf16.msra.mxu0 %v1043_v11  ;;  %v1079_v4 = vor.u32 %v1388_v1, %v1076_v3  ;;  %v1387_v6 = vld [vmem:[#allocation4 + $0x24] sm:$0xf0]  ;;  %v1386_v7 = vld [vmem:[#allocation4 + $0x20] sm:$0xf]  ;;  %v1068_v9 = vld [vmem:[#allocation4 + $0x28] sm:$0xf0] }
  0x27   :  { %v1067_v8 = vor.u32 %v1387_v6, %v1066_v5  ;;  %v1058_v10 = vld [vmem:[#allocation4 + $0x4] sm:$0xf]  ;;  %v1385_v11 = vld [vmem:[#allocation4 + $0xc] sm:$0xf0]  ;;  %v1071_v13 = vor.u32 %v1386_v7, %v1068_v9  ;;  %v1060_v15 = vld [vmem:[#allocation4 + $0x10] sm:$0xf0] }
  0x28   :  { %306 = vmatpush.bf16.msra.mxu1 %v1099_v48  ;;  %v1059_v16 = vor.u32 %v1385_v11, %v1058_v10  ;;  %v1407_v22 = vld [vmem:[#allocation6 + $0x38] sm:$0xff]  ;;  %v1402_v40 = vld [vmem:[#allocation6 + $0x10] sm:$0xff]  ;;  %v201_v44 = vperm.slane %v1665_v26, 1  ;;  %v203_v47 = vperm.slane %v1665_v26, 2  ;;  %v1401_v51 = vld [vmem:[#allocation6 + $0x8] sm:$0xff]  ;;  %v222_v55 = vperm.slane %v1665_v26, 6 }
  0x29   :  { %319 = vmatpush.bf16.msra.mxu2 %v1103_v50  ;;  %463 = vmatpush.bf16.msra.mxu3 %v1407_v22  ;;  %v1403_v36 = vld [vmem:[#allocation6 + $0x18] sm:$0xff]  ;;  %v1410_v52 = vld [vmem:[#allocation6 + $0x50] sm:$0xff]  ;;  %v1400_v53 = vld [vmem:[#allocation6] sm:$0xff] }
  0x2a   :  { %169 = vmatpush.bf16.msra.mxu0 %v1039_v14  ;;  %v1384_v14 = vld [vmem:[#allocation4 + $0x8] sm:$0xf]  ;;  %v1411_v37 = vld [vmem:[#allocation6 + $0x58] sm:$0xff]  ;;  %v1202_v22 = vld [vmem:[#allocation4 + $0x120] sm:$0xf] }
  0x2b   :  { %v98_v57 = vld [vmem:[#allocation7 + $0x8] sm:$0xff] }
  0x2c   :  { %307 = vmatpush.bf16.msra.mxu1 %v1091_v54  ;;  %v1408_v54 = vld [vmem:[#allocation6 + $0x40] sm:$0xff] }
  0x2d   :  { %320 = vmatpush.bf16.msra.mxu2 %v1095_v56 }
  0x2e   :  { %170 = vmatpush.bf16.msra.mxu0 %v1035_v17  ;;  %v1063_v17 = vor.u32 %v1384_v14, %v1060_v15  ;;  %v1423_v14 = vld [vmem:[#allocation4 + $0x170] sm:$0xf0] }
  0x30   :  { %308 = vmatpush.bf16.msra.mxu1 %v1083_v60  ;;  %v223_v60 = vperm.slane %v98_v57, 6 }
  0x31   :  { %321 = vmatpush.bf16.msra.mxu2 %v1087_v62 }
  0x32   :  { %171 = vmatpush.bf16.msra.mxu0 %v1031_v20 }
  0x34   :  { %309 = vmatpush.bf16.msra.mxu1 %v1075_v2 }
  0x35   :  { %322 = vmatpush.bf16.msra.mxu2 %v1079_v4  ;;  %v366_v4 = vperm.slane %v1665_v26, 3 }
  0x36   :  { %172 = vmatpush.bf16.msra.mxu0 %v1027_v23  ;;  %v1415_v23 = vld [vmem:[#allocation6 + $0x78] sm:$0xff] }
  0x38   :  { %310 = vmatpush.bf16.msra.mxu1 %v1067_v8 }
  0x39   :  { %173 = vmatmul.bf16.vlgmr.msra.gmra.mxu0 %v99_v25  ;;  %323 = vmatpush.bf16.msra.mxu2 %v1071_v13  ;;  %v1406_v25 = vld [vmem:[#allocation6 + $0x30] sm:$0xff]  ;;  %v1214_v13 = vld [vmem:[#allocation4 + $0x168] sm:$0xf] }
  0x3a   :  { %476 = vmatpush.bf16.msrb.mxu0 %v1415_v23  ;;  %464 = vmatpush.bf16.msra.mxu3 %v1406_v25  ;;  %v1215_v15 = vor.u32 %v1423_v14, %v1214_v13  ;;  %v1420_v23 = vld [vmem:[#allocation4 + $0x128] sm:$0xf0]  ;;  %v1198_v25 = vld [vmem:[#allocation4 + $0x108] sm:$0xf]  ;;  %v1258_v13 = vld [vmem:[#allocation4 + $0x13c] sm:$0xf] }
  0x3b   :  { %v1435_v14 = vld [vmem:[#allocation4 + $0x144] sm:$0xf0] }
  0x3c   :  { %311 = vmatpush.bf16.msra.mxu1 %v1059_v16  ;;  %v1210_v16 = vld [vmem:[#allocation4 + $0x150] sm:$0xf] }
  0x3d   :  { %324 = vmatpush.bf16.msra.mxu2 %v1063_v17  ;;  %v1422_v17 = vld [vmem:[#allocation4 + $0x158] sm:$0xf0] }
  0x40   :  { %586 = vmatpush.bf16.msrb.mxu1 %v1215_v15  ;;  %v1434_v15 = vld [vmem:[#allocation4 + $0x140] sm:$0xf] }
  0xb6   :  { %v174_v28 = vpop.f32.mrf.mxu0 }
  0xb7   :  { %v175_v29 = vadd.f32 %v174_v28, %v116_v27  ;;  %v1414_v27 = vld [vmem:[#allocation6 + $0x70] sm:$0xff] }
  0xb8   :  { %477 = vmatpush.bf16.msrb.mxu0 %v1414_v27  ;;  %v1419_v27 = vld [vmem:[#allocation4 + $0x110] sm:$0xf0] }
  0xb9   :  { %v1668_v30 = vadd.f32 %v175_v29, %v96_v24  ;;  %v1405_v29 = vld [vmem:[#allocation6 + $0x28] sm:$0xff] }
  0xba   :  { %465 = vmatpush.bf16.msra.mxu3 %v1405_v29  ;;  %v1194_v29 = vld [vmem:[#allocation4 + $0xf0] sm:$0xf] }
  0xbb   :  { %179 = vadd.xlane.f32.xlu0 %v1668_v30  ;;  %v182_v32 = vmul.f32 %v1668_v30, %v1668_v30 }
  0xbe   :  { %v176_v31 = vpop.f32.mrf.mxu0 }
  0xbf   :  { %v1413_v31 = vld [vmem:[#allocation6 + $0x68] sm:$0xff] }
  0xc0   :  { %478 = vmatpush.bf16.msrb.mxu0 %v1413_v31  ;;  %v1418_v31 = vld [vmem:[#allocation4 + $0xf8] sm:$0xf0] }
  0xc3   :  { %183 = vadd.xlane.f32.xlu0 %v182_v32  ;;  %v1404_v32 = vld [vmem:[#allocation6 + $0x20] sm:$0xff] }
  0xc4   :  { %466 = vmatpush.bf16.msra.mxu3 %v1404_v32  ;;  %479 = vmatpush.bf16.msrb.mxu0 %v1412_v33  ;;  %v1195_v32 = vor.u32 %v1418_v31, %v1194_v29  ;;  %v1190_v33 = vld [vmem:[#allocation4 + $0xd8] sm:$0xf]  ;;  %v1244_v31 = vld [vmem:[#allocation4 + $0x118] sm:$0xf0] }
  0xc8   :  { %467 = vmatpush.bf16.msra.mxu3 %v1403_v36  ;;  %480 = vmatpush.bf16.msrb.mxu0 %v1411_v37  ;;  %v1186_v37 = vld [vmem:[#allocation4 + $0xc0] sm:$0xf] }
  0xcc   :  { %468 = vmatpush.bf16.msra.mxu3 %v1402_v40  ;;  %481 = vmatpush.bf16.msrb.mxu0 %v1410_v52 }
  0xd0   :  { %469 = vmatpush.bf16.msra.mxu3 %v1401_v51 }
  0xd4   :  { %470 = vmatpush.bf16.msra.mxu3 %v1400_v53  ;;  %v512_v53 = vperm.slane %v1665_v26, 4 }
 0x12e   :  { %v180_v12 = vpop.xlane.xlu0 %179 }
 0x12f   :  { %v181_v18 = vmul.f32 0.0078125, %v180_v12 }
 0x131   :  { %v186_v20 = vmul.f32 %v181_v18, %v181_v18  ;;  %v188_v43 = vsub.f32 %v1668_v30, %v181_v18  ;;  %v1409_v30 = vld [vmem:[#allocation6 + $0x48] sm:$0xff]  ;;  %v1211_v18 = vor.u32 %v1422_v17, %v1210_v16  ;;  %v1259_v16 = vor.u32 %v1435_v14, %v1258_v13 }
 0x132   :  { %482 = vmatpush.bf16.msrb.mxu0 %v1409_v30  ;;  %v1260_v17 = vld [vmem:[#allocation4 + $0x148] sm:$0xf0] }
 0x133   :  { %587 = vmatpush.bf16.msrb.mxu1 %v1211_v18  ;;  %v1263_v18 = vor.u32 %v1434_v15, %v1260_v17 }
 0x136   :  { %v184_v19 = vpop.xlane.xlu0 %183  ;;  %483 = vmatpush.bf16.msrb.mxu0 %v1408_v54 }
 0x137   :  { %v185_v21 = vmul.f32 0.0078125, %v184_v19  ;;  %v1206_v19 = vld [vmem:[#allocation4 + $0x138] sm:$0xf] }
 0x139   :  { %v187_v24 = vsub.f32 %v185_v21, %v186_v20  ;;  %v1421_v20 = vld [vmem:[#allocation4 + $0x140] sm:$0xf0] }
 0x13a   :  { %v1207_v21 = vor.u32 %v1421_v20, %v1206_v19  ;;  %v1250_v19 = vld [vmem:[#allocation4 + $0x124] sm:$0xf]  ;;  %v1433_v20 = vld [vmem:[#allocation4 + $0x12c] sm:$0xf0] }
 0x13b   :  { %v189_v28 = vadd.f32 1e-05, %v187_v24  ;;  %v1203_v24 = vor.u32 %v1420_v23, %v1202_v22  ;;  %v1251_v22 = vor.u32 %v1433_v20, %v1250_v19  ;;  %v1252_v23 = vld [vmem:[#allocation4 + $0x130] sm:$0xf0]  ;;  %v1441_v20 = vld [vmem:[#allocation6 + $0x88] sm:$0xff] }
 0x13c   :  { %588 = vmatpush.bf16.msrb.mxu1 %v1207_v21  ;;  %v1432_v21 = vld [vmem:[#allocation4 + $0x128] sm:$0xf] }
 0x13d   :  { %1475 = vrsqrt.f32 %v189_v28  ;;  %vm196_vm1 = vweird.f32 %v189_v28 }
 0x140   :  { %589 = vmatpush.bf16.msrb.mxu1 %v1203_v24  ;;  %v1255_v24 = vor.u32 %v1432_v21, %v1252_v23  ;;  %v1449_v21 = vld [vmem:[#allocation6 + $0xc8] sm:$0xff]  ;;  %v518_v23 = vld [vmem:[#allocation7 + $0x18] sm:$0xff] }
 0x143   :  { %v1476_v34 = vpop.eup %1475 }
 0x144   :  { %v191_v35 = vmul.f32 %v1476_v34, %v189_v28  ;;  %vm197_vm0 = vweird.f32 %v1476_v34  ;;  %v1199_v28 = vor.u32 %v1419_v27, %v1198_v25  ;;  %v1242_v25 = vld [vmem:[#allocation4 + $0x10c] sm:$0xf]  ;;  %v1431_v27 = vld [vmem:[#allocation4 + $0x114] sm:$0xf0] }
 0x145   :  { %vm198_vm2 = vmor %vm196_vm1, %vm197_vm0  ;;  %v1243_v29 = vor.u32 %v1431_v27, %v1242_v25  ;;  %v644_v25 = vperm.slane %v518_v23, 6 }
 0x146   :  { %v192_v38 = vmul.f32 %v1476_v34, %v191_v35  ;;  %590 = vmatpush.bf16.msrb.mxu1 %v1199_v28  ;;  %v1430_v28 = vld [vmem:[#allocation4 + $0x110] sm:$0xf] }
 0x148   :  { %v193_v39 = vmul.f32 0.5, %v192_v38  ;;  %v1416_v38 = vld [vmem:[#allocation4 + $0xc8] sm:$0xf0] }
 0x14a   :  { %v194_v41 = vsub.f32 1.5, %v193_v39  ;;  %591 = vmatpush.bf16.msrb.mxu1 %v1195_v32  ;;  %v1187_v39 = vor.u32 %v1416_v38, %v1186_v37  ;;  %v1247_v32 = vor.u32 %v1430_v28, %v1244_v31  ;;  %v1236_v37 = vld [vmem:[#allocation4 + $0x100] sm:$0xf0] }
 0x14c   :  { %v195_v42 = vmul.f32 %v1476_v34, %v194_v41 }
 0x14e   :  { %v199_v45 = vsel %vm198_vm2, %v1476_v34, %v195_v42  ;;  %v1417_v34 = vld [vmem:[#allocation4 + $0xe0] sm:$0xf0] }
 0x14f   :  { %v200_v46 = vmul.f32 %v199_v45, %v188_v43  ;;  %v1191_v36 = vor.u32 %v1417_v34, %v1190_v33  ;;  %v1234_v33 = vld [vmem:[#allocation4 + $0xf4] sm:$0xf]  ;;  %v1429_v34 = vld [vmem:[#allocation4 + $0xfc] sm:$0xf0] }
 0x151   :  { %v202_v48 = vmul.f32 %v201_v44, %v200_v46  ;;  %592 = vmatpush.bf16.msrb.mxu1 %v1191_v36  ;;  %v1235_v36 = vor.u32 %v1429_v34, %v1234_v33 }
 0x153   :  { %v204_v49 = vadd.f32 %v203_v47, %v202_v48 }
 0x155   :  { %v205_v50 = vpack.c.bf16 %v204_v49, %v204_v49  ;;  %593 = vmatpush.bf16.msrb.mxu1 %v1187_v39  ;;  %v1226_v39 = vld [vmem:[#allocation4 + $0xdc] sm:$0xf] }
 0x157   :  { %312 = vmatmul.bf16.vlgmr.msra.gmra.mxu1 %v205_v50  ;;  %325 = vmatmul.bf16.vlgmr.msra.gmra.mxu2 %v205_v50 }
 0x1d4   :  { %v313_v56 = vpop.f32.mrf.mxu1 }
 0x1d5   :  { %v314_v58 = vadd.f32 %v313_v56, %v222_v55  ;;  %v514_v55 = vperm.slane %v1665_v26, 5  ;;  %v1274_v26 = vld [vmem:[#allocation4 + $0x16c] sm:$0xf] }
 0x1d7   :  { %v330_v59 = vmax.f32 %v314_v58, 0.0 }
 0x1d9   :  { %v332_v61 = vpack.c.bf16 %v330_v59, %v330_v59  ;;  %v1680_v59 = vld [vmem:[#allocation7 + $0x10] sm:$0xff] }
 0x1da   :  { %v326_v62 = vpop.f32.mrf.mxu2  ;;  %v622_v13 = vperm.slane %v1680_v59, 1 }
 0x1db   :  { %v327_v63 = vadd.f32 %v326_v62, %v223_v60  ;;  %471 = vmatmul.bf16.vlgmr.msra.gmra.mxu3 %v332_v61  ;;  %v537_v60 = vperm.slane %v1680_v59, 0 }
 0x1dc   :  { %v315_v0 = vpop.f32.mrf.mxu1 }
 0x1dd   :  { %v331_v1 = vmax.f32 %v327_v63, 0.0 }
 0x1df   :  { %v333_v2 = vpack.c.bf16 %v331_v1, %v331_v1 }
 0x1e1   :  { %484 = vmatmul.bf16.vlgmr.msrb.gmra.mxu0 %v333_v2  ;;  %v1439_v2 = vld [vmem:[#allocation4 + $0x174] sm:$0xf0] }
 0x1e2   :  { %v328_v3 = vpop.f32.mrf.mxu2 }
 0x1e3   :  { %v1438_v3 = vld [vmem:[#allocation4 + $0x170] sm:$0xf] }
 0x25e   :  { %v472_v5 = vpop.f32.mrf.mxu3  ;;  %v485_v6 = vpop.f32.mrf.mxu0 }
 0x25f   :  { %v473_v7 = vadd.f32 %v472_v5, %v366_v4  ;;  %v1275_v4 = vor.u32 %v1439_v2, %v1274_v26  ;;  %v1276_v5 = vld [vmem:[#allocation4 + $0x178] sm:$0xf0]  ;;  %v1452_v26 = vld [vmem:[#allocation6 + $0xe0] sm:$0xff] }
 0x261   :  { %v486_v8 = vadd.f32 %v485_v6, %v473_v7  ;;  %v1279_v6 = vor.u32 %v1438_v3, %v1276_v5  ;;  %725 = vmatpush.bf16.msrb.mxu2 %v1275_v4  ;;  %v1266_v7 = vld [vmem:[#allocation4 + $0x154] sm:$0xf]  ;;  %v1443_v4 = vld [vmem:[#allocation6 + $0x98] sm:$0xff] }
 0x262   :  { %v1451_v5 = vld [vmem:[#allocation6 + $0xd8] sm:$0xff] }
 0x263   :  { %v489_v9 = vadd.f32 %v486_v8, %v204_v49  ;;  %738 = vmatpush.bf16.msrb.mxu3 %v1279_v6  ;;  %v1437_v8 = vld [vmem:[#allocation4 + $0x15c] sm:$0xf0] }
 0x265   :  { %490 = vadd.xlane.f32.xlu1 %v489_v9  ;;  %v493_v12 = vmul.f32 %v489_v9, %v489_v9 }
 0x266   :  { %v474_v10 = vpop.f32.mrf.mxu3  ;;  %v487_v11 = vpop.f32.mrf.mxu0 }
 0x267   :  { %v1267_v10 = vor.u32 %v1437_v8, %v1266_v7  ;;  %v1268_v11 = vld [vmem:[#allocation4 + $0x160] sm:$0xf0]  ;;  %v1442_v8 = vld [vmem:[#allocation6 + $0x90] sm:$0xff] }
 0x269   :  { %726 = vmatpush.bf16.msrb.mxu2 %v1267_v10 }
 0x26d   :  { %494 = vadd.xlane.f32.xlu1 %v493_v12  ;;  %727 = vmatpush.bf16.msrb.mxu2 %v1259_v16  ;;  %v624_v16 = vperm.slane %v1680_v59, 2 }
 0x271   :  { %728 = vmatpush.bf16.msrb.mxu2 %v1251_v22  ;;  %v1440_v22 = vld [vmem:[#allocation6 + $0x80] sm:$0xff] }
 0x275   :  { %729 = vmatpush.bf16.msrb.mxu2 %v1243_v29 }
 0x279   :  { %730 = vmatpush.bf16.msrb.mxu2 %v1235_v36 }
 0x2d8   :  { %v491_v35 = vpop.xlane.xlu1 %490 }
 0x2d9   :  { %v492_v40 = vmul.f32 0.0078125, %v491_v35  ;;  %v1428_v35 = vld [vmem:[#allocation4 + $0xf8] sm:$0xf] }
 0x2da   :  { %v1239_v38 = vor.u32 %v1428_v35, %v1236_v37 }
 0x2db   :  { %v497_v42 = vmul.f32 %v492_v40, %v492_v40  ;;  %v499_v52 = vsub.f32 %v489_v9, %v492_v40  ;;  %v1436_v9 = vld [vmem:[#allocation4 + $0x158] sm:$0xf]  ;;  %v1427_v40 = vld [vmem:[#allocation4 + $0xe4] sm:$0xf0] }
 0x2dc   :  { %v1271_v12 = vor.u32 %v1436_v9, %v1268_v11  ;;  %v1450_v9 = vld [vmem:[#allocation6 + $0xd0] sm:$0xff] }
 0x2de   :  { %739 = vmatpush.bf16.msrb.mxu3 %v1271_v12 }
 0x2e0   :  { %v495_v41 = vpop.xlane.xlu1 %494 }
 0x2e1   :  { %v496_v43 = vmul.f32 0.0078125, %v495_v41  ;;  %v1426_v41 = vld [vmem:[#allocation4 + $0xe0] sm:$0xf] }
 0x2e2   :  { %740 = vmatpush.bf16.msrb.mxu3 %v1263_v18 }
 0x2e3   :  { %v498_v44 = vsub.f32 %v496_v43, %v497_v42  ;;  %v1227_v43 = vor.u32 %v1427_v40, %v1226_v39 }
 0x2e5   :  { %v500_v45 = vadd.f32 1e-05, %v498_v44  ;;  %v1228_v44 = vld [vmem:[#allocation4 + $0xe8] sm:$0xf0]  ;;  %731 = vmatpush.bf16.msrb.mxu2 %v1227_v43 }
 0x2e6   :  { %741 = vmatpush.bf16.msrb.mxu3 %v1255_v24  ;;  %v643_v24 = vperm.slane %v1680_v59, 6 }
 0x2e7   :  { %1477 = vrsqrt.f32 %v500_v45  ;;  %vm507_vm4 = vweird.f32 %v500_v45 }
 0x2ea   :  { %742 = vmatpush.bf16.msrb.mxu3 %v1247_v32 }
 0x2ed   :  { %v1478_v46 = vpop.eup %1477 }
 0x2ee   :  { %v502_v47 = vmul.f32 %v1478_v46, %v500_v45  ;;  %vm508_vm3 = vweird.f32 %v1478_v46  ;;  %743 = vmatpush.bf16.msrb.mxu3 %v1239_v38  ;;  %v1218_v45 = vld [vmem:[#allocation4 + $0xc4] sm:$0xf]  ;;  %v788_v38 = vperm.slane %v1680_v59, 3 }
 0x2ef   :  { %vm509_vm5 = vmor %vm507_vm4, %vm508_vm3 }
 0x2f0   :  { %v503_v48 = vmul.f32 %v1478_v46, %v502_v47  ;;  %v1231_v47 = vor.u32 %v1426_v41, %v1228_v44 }
 0x2f2   :  { %v504_v49 = vmul.f32 0.5, %v503_v48  ;;  %v1424_v48 = vld [vmem:[#allocation4 + $0xc8] sm:$0xf]  ;;  %744 = vmatpush.bf16.msrb.mxu3 %v1231_v47  ;;  %v1463_v47 = vld [vmem:[#allocation9 + $0x38] sm:$0xff] }
 0x2f4   :  { %v505_v50 = vsub.f32 1.5, %v504_v49  ;;  %v1220_v49 = vld [vmem:[#allocation4 + $0xd0] sm:$0xf0] }
 0x2f6   :  { %v506_v51 = vmul.f32 %v1478_v46, %v505_v50 }
 0x2f8   :  { %v510_v30 = vsel %vm509_vm5, %v1478_v46, %v506_v51  ;;  %v1425_v46 = vld [vmem:[#allocation4 + $0xcc] sm:$0xf0]  ;;  %v1223_v51 = vor.u32 %v1424_v48, %v1220_v49  ;;  %v1461_v49 = vld [vmem:[#allocation9 + $0x28] sm:$0xff] }
 0x2f9   :  { %v511_v54 = vmul.f32 %v510_v30, %v499_v52  ;;  %v1219_v50 = vor.u32 %v1425_v46, %v1218_v45  ;;  %v1462_v48 = vld [vmem:[#allocation9 + $0x30] sm:$0xff] }
 0x2fa   :  { %745 = vmatpush.bf16.msrb.mxu3 %v1223_v51  ;;  %v1459_v51 = vld [vmem:[#allocation9 + $0x18] sm:$0xff] }
 0x2fb   :  { %v513_v56 = vmul.f32 %v512_v53, %v511_v54  ;;  %732 = vmatpush.bf16.msrb.mxu2 %v1219_v50  ;;  %v1460_v50 = vld [vmem:[#allocation9 + $0x20] sm:$0xff] }
 0x2fd   :  { %v515_v57 = vadd.f32 %v514_v55, %v513_v56  ;;  %v1447_v55 = vld [vmem:[#allocation6 + $0xb8] sm:$0xff] }
 0x2fe   :  { %v1455_v56 = vld [vmem:[#allocation6 + $0xf8] sm:$0xff]  ;;  %885 = vmatpush.bf16.msra.mxu0 %v1447_v55 }
 0x2ff   :  { %v519_v58 = vpack.c.bf16 %v515_v57, %v515_v57  ;;  %898 = vmatpush.bf16.msra.mxu1 %v1455_v56  ;;  %1003 = vmatpush.bf16.msra.mxu2 %v1463_v47 }
 0x301   :  { %594 = vmatmul.bf16.vlgmr.msrb.gmra.mxu1 %v519_v58  ;;  %v1446_v58 = vld [vmem:[#allocation6 + $0xb0] sm:$0xff] }
 0x302   :  { %886 = vmatpush.bf16.msra.mxu0 %v1446_v58 }
 0x303   :  { %1004 = vmatpush.bf16.msra.mxu2 %v1462_v48 }
 0x307   :  { %1005 = vmatpush.bf16.msra.mxu2 %v1461_v49 }
 0x30b   :  { %1006 = vmatpush.bf16.msra.mxu2 %v1460_v50 }
 0x30f   :  { %1007 = vmatpush.bf16.msra.mxu2 %v1459_v51 }
 0x37e   :  { %v595_v61 = vpop.f32.mrf.mxu1 }
 0x37f   :  { %v596_v62 = vadd.f32 %v595_v61, %v537_v60  ;;  %v1454_v60 = vld [vmem:[#allocation6 + $0xf0] sm:$0xff] }
 0x380   :  { %899 = vmatpush.bf16.msra.mxu1 %v1454_v60 }
 0x381   :  { %v1683_v63 = vadd.f32 %v596_v62, %v515_v57  ;;  %v1445_v62 = vld [vmem:[#allocation6 + $0xa8] sm:$0xff] }
 0x382   :  { %887 = vmatpush.bf16.msra.mxu0 %v1445_v62 }
 0x383   :  { %600 = vadd.xlane.f32.xlu2 %v1683_v63  ;;  %v603_v1 = vmul.f32 %v1683_v63, %v1683_v63 }
 0x386   :  { %v597_v0 = vpop.f32.mrf.mxu1 }
 0x387   :  { %v1453_v0 = vld [vmem:[#allocation6 + $0xe8] sm:$0xff] }
 0x388   :  { %900 = vmatpush.bf16.msra.mxu1 %v1453_v0 }
 0x38b   :  { %604 = vadd.xlane.f32.xlu2 %v603_v1  ;;  %v1444_v1 = vld [vmem:[#allocation6 + $0xa0] sm:$0xff] }
 0x38c   :  { %888 = vmatpush.bf16.msra.mxu0 %v1444_v1  ;;  %901 = vmatpush.bf16.msra.mxu1 %v1452_v26 }
 0x390   :  { %889 = vmatpush.bf16.msra.mxu0 %v1443_v4  ;;  %902 = vmatpush.bf16.msra.mxu1 %v1451_v5  ;;  %v934_v5 = vperm.slane %v1680_v59, 4 }
 0x394   :  { %890 = vmatpush.bf16.msra.mxu0 %v1442_v8  ;;  %903 = vmatpush.bf16.msra.mxu1 %v1450_v9  ;;  %v936_v8 = vperm.slane %v1680_v59, 5 }
 0x398   :  { %891 = vmatpush.bf16.msra.mxu0 %v1441_v20  ;;  %904 = vmatpush.bf16.msra.mxu1 %v1449_v21 }
 0x39c   :  { %892 = vmatpush.bf16.msra.mxu0 %v1440_v22 }
 0x3f6   :  { %v601_v42 = vpop.xlane.xlu2 %600 }
 0x3f7   :  { %v602_v52 = vmul.f32 0.0078125, %v601_v42 }
 0x3f9   :  { %v607_v30 = vmul.f32 %v602_v52, %v602_v52  ;;  %v609_v12 = vsub.f32 %v1683_v63, %v602_v52  ;;  %v1448_v63 = vld [vmem:[#allocation6 + $0xc0] sm:$0xff]  ;;  %v1458_v52 = vld [vmem:[#allocation9 + $0x10] sm:$0xff] }
 0x3fa   :  { %905 = vmatpush.bf16.msra.mxu1 %v1448_v63  ;;  %1008 = vmatpush.bf16.msra.mxu2 %v1458_v52 }
 0x3fe   :  { %v605_v53 = vpop.xlane.xlu2 %604 }
 0x3ff   :  { %v606_v54 = vmul.f32 0.0078125, %v605_v53  ;;  %v1457_v53 = vld [vmem:[#allocation9 + $0x8] sm:$0xff] }
 0x400   :  { %1009 = vmatpush.bf16.msra.mxu2 %v1457_v53 }
 0x401   :  { %v608_v57 = vsub.f32 %v606_v54, %v607_v30  ;;  %v1456_v30 = vld [vmem:[#allocation9] sm:$0xff] }
 0x403   :  { %v610_v61 = vadd.f32 1e-05, %v608_v57 }
 0x404   :  { %1010 = vmatpush.bf16.msra.mxu2 %v1456_v30 }
 0x405   :  { %1479 = vrsqrt.f32 %v610_v61  ;;  %vm617_vm7 = vweird.f32 %v610_v61 }
 0x40b   :  { %v1480_v2 = vpop.eup %1479 }
 0x40c   :  { %v612_v3 = vmul.f32 %v1480_v2, %v610_v61  ;;  %vm618_vm6 = vweird.f32 %v1480_v2 }
 0x40d   :  { %vm619_vm8 = vmor %vm617_vm7, %vm618_vm6 }
 0x40e   :  { %v613_v6 = vmul.f32 %v1480_v2, %v612_v3 }
 0x410   :  { %v614_v7 = vmul.f32 0.5, %v613_v6 }
 0x412   :  { %v615_v10 = vsub.f32 1.5, %v614_v7 }
 0x414   :  { %v616_v11 = vmul.f32 %v1480_v2, %v615_v10 }
 0x416   :  { %v620_v14 = vsel %vm619_vm8, %v1480_v2, %v616_v11 }
 0x417   :  { %v621_v15 = vmul.f32 %v620_v14, %v609_v12 }
 0x419   :  { %v623_v17 = vmul.f32 %v622_v13, %v621_v15 }
 0x41b   :  { %v625_v18 = vadd.f32 %v624_v16, %v623_v17 }
 0x41d   :  { %v626_v19 = vpack.c.bf16 %v625_v18, %v625_v18 }
 0x41f   :  { %733 = vmatmul.bf16.vlgmr.msrb.gmra.mxu2 %v626_v19  ;;  %746 = vmatmul.bf16.vlgmr.msrb.gmra.mxu3 %v626_v19 }
 0x4a2   :  { %v734_v27 = vpop.f32.mrf.mxu2  ;;  %v747_v28 = vpop.f32.mrf.mxu3 }
 0x4a3   :  { %v735_v29 = vadd.f32 %v734_v27, %v643_v24  ;;  %v748_v31 = vadd.f32 %v747_v28, %v644_v25 }
 0x4a5   :  { %v751_v32 = vmax.f32 %v735_v29, 0.0  ;;  %v752_v33 = vmax.f32 %v748_v31, 0.0 }
 0x4a7   :  { %v753_v34 = vpack.c.bf16 %v751_v32, %v751_v32  ;;  %v754_v35 = vpack.c.bf16 %v752_v33, %v752_v33 }
 0x4a9   :  { %893 = vmatmul.bf16.vlgmr.msra.gmra.mxu0 %v753_v34  ;;  %906 = vmatmul.bf16.vlgmr.msra.gmra.mxu1 %v754_v35 }
 0x4aa   :  { %v736_v36 = vpop.f32.mrf.mxu2  ;;  %v749_v37 = vpop.f32.mrf.mxu3 }
 0x526   :  { %v894_v39 = vpop.f32.mrf.mxu0  ;;  %v907_v40 = vpop.f32.mrf.mxu1 }
 0x527   :  { %v895_v41 = vadd.f32 %v894_v39, %v788_v38 }
 0x529   :  { %v908_v42 = vadd.f32 %v907_v40, %v895_v41 }
 0x52b   :  { %v911_v43 = vadd.f32 %v908_v42, %v625_v18 }
 0x52d   :  { %912 = vadd.xlane.f32.xlu0 %v911_v43  ;;  %v915_v44 = vmul.f32 %v911_v43, %v911_v43 }
 0x52e   :  { %v896_v45 = vpop.f32.mrf.mxu0  ;;  %v909_v46 = vpop.f32.mrf.mxu1 }
 0x52f   :  { %916 = vadd.xlane.f32.xlu1 %v915_v44 }
 0x5a0   :  { %v913_v54 = vpop.xlane.xlu0 %912 }
 0x5a1   :  { %v914_v55 = vmul.f32 0.0078125, %v913_v54 }
 0x5a2   :  { %v917_v56 = vpop.xlane.xlu1 %916 }
 0x5a3   :  { %v919_v57 = vmul.f32 %v914_v55, %v914_v55  ;;  %v918_v58 = vmul.f32 0.0078125, %v917_v56  ;;  %v921_v4 = vsub.f32 %v911_v43, %v914_v55 }
 0x5a5   :  { %v920_v60 = vsub.f32 %v918_v58, %v919_v57 }
 0x5a7   :  { %v922_v61 = vadd.f32 1e-05, %v920_v60 }
 0x5a9   :  { %1481 = vrsqrt.f32 %v922_v61  ;;  %vm929_vm10 = vweird.f32 %v922_v61 }
 0x5af   :  { %v1482_v62 = vpop.eup %1481 }
 0x5b0   :  { %v924_v0 = vmul.f32 %v1482_v62, %v922_v61  ;;  %vm930_vm9 = vweird.f32 %v1482_v62 }
 0x5b1   :  { %vm931_vm11 = vmor %vm929_vm10, %vm930_vm9 }
 0x5b2   :  { %v925_v1 = vmul.f32 %v1482_v62, %v924_v0 }
 0x5b4   :  { %v926_v26 = vmul.f32 0.5, %v925_v1 }
 0x5b6   :  { %v927_v2 = vsub.f32 1.5, %v926_v26 }
 0x5b8   :  { %v928_v3 = vmul.f32 %v1482_v62, %v927_v2 }
 0x5ba   :  { %v932_v6 = vsel %vm931_vm11, %v1482_v62, %v928_v3 }
 0x5bb   :  { %v933_v7 = vmul.f32 %v932_v6, %v921_v4 }
 0x5bd   :  { %v935_v9 = vmul.f32 %v934_v5, %v933_v7 }
 0x5bf   :  { %v937_v10 = vadd.f32 %v936_v8, %v935_v9 }
 0x5c1   :  { %v938_v11 = vpack.c.bf16 %v937_v10, %v937_v10 }
 0x5c3   :  { %1011 = vmatmul.bf16.vlgmr.msra.gmra.mxu2 %v938_v11 }
 0x646   :  { %v1012_v12 = vpop.f32.mrf.mxu2 }
 0x647   :  { %1016 = vst [vmem:[%s1703_s5] sm:$0xff] %v1012_v12 }
 0x64e   :  { %v1014_v13 = vpop.f32.mrf.mxu2 }
 0x64f   :  { %1021 = vsyncpa [#allocation3], 1 }
 0x650   :  { %1022 = vsyncpa [#allocation5], 1 }
 0x651   :  { %1023 = vsyncpa [#allocation8], 1 }

</bundles_post_ra>
